<compile_context>
chip_gen: v7x
topology: tpu7x:2x2x1
jax: 0.10.0
libtpu: 0.0.40
codegen_flags: <defaults>
</compile_context>

<pallas_src>
import functools
import math

import jax
import jax.numpy as jnp
import numpy as np
from jax.experimental import pallas as pl
from jax.experimental.pallas import tpu as pltpu


def _round_up(n, m):
    return (n + m - 1) // m * m


def _rnn_kernel(num_layers, seq_len, batch_pad, x_ref, *args):
    """Multi-layer tanh-RNN + Linear + Sigmoid in one invocation.

    args layout: w_ih[L], w_hh[L], b[L], w_fc, b_fc, out_ref
      x_ref : (T*B_pad, I_pad)   time-major, flattened, zero-padded
      w_ih  : (I_l_pad, H_pad)   w_hh: (H_pad, H_pad)   b: (1, H_pad)
      w_fc  : (H_pad, O_pad)     b_fc: (1, O_pad)
      out   : (B_pad, O_pad)
    """
    L, T, B = num_layers, seq_len, batch_pad
    w_ih_refs = args[0:L]
    w_hh_refs = args[L:2 * L]
    b_refs = args[2 * L:3 * L]
    w_fc_ref = args[3 * L]
    b_fc_ref = args[3 * L + 1]
    out_ref = args[3 * L + 2]

    H = w_hh_refs[0].shape[0]

    inp = x_ref[...]                                  # (T*B, I_pad)
    h = None
    for l in range(L):
        w_hh = w_hh_refs[l][...]                      # resident for whole layer
        # Batched input projection for all T steps at once (single MXU matmul);
        # the bias broadcast is hoisted out of the time loop.
        z = jnp.dot(inp, w_ih_refs[l][...],
                    preferred_element_type=jnp.float32) + b_refs[l][...]
        h = jnp.zeros((B, H), jnp.float32)
        outs = []
        for t in range(T):                            # static unroll; h stays in vregs
            pre = z[t * B:(t + 1) * B, :] + jnp.dot(
                h, w_hh, preferred_element_type=jnp.float32)
            h = jnp.tanh(pre)
            if l < L - 1:
                outs.append(h)
        if l < L - 1:
            # Next layer's input: all T step outputs, still in vregs
            # (sublane-aligned concat: each block is (8, 128) = one vreg).
            inp = jnp.concatenate(outs, axis=0)       # (T*B, H_pad)

    logits = jnp.dot(h, w_fc_ref[...],
                     preferred_element_type=jnp.float32) + b_fc_ref[...]
    out_ref[...] = jax.nn.sigmoid(logits)             # lane-dense unmasked store


def rnn_model_forward(x_btI, params, *, num_layers, hidden_size, output_size):
    """x_btI: (B, T, I) batch-first float32 input (PyTorch convention)."""
    B, T, I = x_btI.shape
    w_ih_list, w_hh_list, b_list, w_fc, b_fc = params
    L, H, O = num_layers, hidden_size, output_size

    B_pad = _round_up(B, 8)          # sublane alignment
    I_pad = _round_up(I, 128)        # lane alignment
    H_pad = _round_up(H, 128)
    O_pad = _round_up(O, 128)

    # Time-major, batch-padded, flattened to (T*B_pad, I_pad).
    x_tbi = jnp.transpose(x_btI, (1, 0, 2)).astype(jnp.float32)
    x_p = jnp.zeros((T, B_pad, I_pad), jnp.float32).at[:, :B, :I].set(x_tbi)
    x_flat = x_p.reshape(T * B_pad, I_pad)

    def pad2(w, r, c):
        return jnp.zeros((r, c), jnp.float32).at[:w.shape[0], :w.shape[1]].set(w)

    w_ih_p = []
    for l, w in enumerate(w_ih_list):
        in_dim_pad = I_pad if l == 0 else H_pad
        w_ih_p.append(pad2(w, in_dim_pad, H_pad))
    w_hh_p = [pad2(w, H_pad, H_pad) for w in w_hh_list]
    b_p = [pad2(b, 1, H_pad) for b in b_list]
    w_fc_p = pad2(w_fc, H_pad, O_pad)
    b_fc_p = pad2(b_fc, 1, O_pad)

    kernel = functools.partial(_rnn_kernel, L, T, B_pad)

    vmem = pl.BlockSpec(memory_space=pltpu.MemorySpace.VMEM)
    n_in = 1 + 3 * L + 2

    # Note for v7x: with larger batches, split the batch over a leading
    # "parallel" grid axis (or core_map over 2 TCs) to use the second core.
    out = pl.pallas_call(
        kernel,
        out_shape=jax.ShapeDtypeStruct((B_pad, O_pad), jnp.float32),
        in_specs=[vmem] * n_in,
        out_specs=vmem,
    )(x_flat, *w_ih_p, *w_hh_p, *b_p, w_fc_p, b_fc_p)
    return out[:B, :O]


def init_params(key, input_size, hidden_size, num_layers, output_size):
    """Deterministic init mimicking PyTorch's U(-1/sqrt(H), 1/sqrt(H))."""
    k = 1.0 / math.sqrt(hidden_size)
    keys = jax.random.split(key, 4 * num_layers + 2)
    w_ih_list, w_hh_list, b_list = [], [], []
    idx = 0
    for l in range(num_layers):
        in_dim = input_size if l == 0 else hidden_size
        # weights stored pre-transposed: (in_dim, H) so the kernel does x @ W
        w_ih = jax.random.uniform(keys[idx], (in_dim, hidden_size),
                                  jnp.float32, -k, k); idx += 1
        w_hh = jax.random.uniform(keys[idx], (hidden_size, hidden_size),
                                  jnp.float32, -k, k); idx += 1
        b_ih = jax.random.uniform(keys[idx], (1, hidden_size),
                                  jnp.float32, -k, k); idx += 1
        b_hh = jax.random.uniform(keys[idx], (1, hidden_size),
                                  jnp.float32, -k, k); idx += 1
        w_ih_list.append(w_ih)
        w_hh_list.append(w_hh)
        b_list.append(b_ih + b_hh)     # combined bias, same semantics as nn.RNN
    w_fc = jax.random.uniform(keys[idx], (hidden_size, output_size),
                              jnp.float32, -k, k); idx += 1
    b_fc = jax.random.uniform(keys[idx], (1, output_size),
                              jnp.float32, -k, k)
    return (w_ih_list, w_hh_list, b_list, w_fc, b_fc)


def reference_forward(x_btI, params):
    """Pure-JAX reference matching nn.RNN(tanh) + Linear + Sigmoid."""
    w_ih_list, w_hh_list, b_list, w_fc, b_fc = params
    B, T, _ = x_btI.shape
    H = w_hh_list[0].shape[0]
    inp = x_btI
    for w_ih, w_hh, b in zip(w_ih_list, w_hh_list, b_list):
        h = jnp.zeros((B, H), jnp.float32)
        outs = []
        for t in range(T):
            h = jnp.tanh(inp[:, t, :] @ w_ih + h @ w_hh + b)
            outs.append(h)
        inp = jnp.stack(outs, axis=1)
    last = inp[:, -1, :]
    return jax.nn.sigmoid(last @ w_fc + b_fc)


if __name__ == "__main__":
    # Small shapes consistent with the module's forward.
    batch, seq_len = 4, 8
    input_size, hidden_size, num_layers, output_size = 16, 32, 2, 8

    key = jax.random.PRNGKey(0)
    pkey, xkey = jax.random.split(key)
    params = init_params(pkey, input_size, hidden_size, num_layers, output_size)
    x = jax.random.normal(xkey, (batch, seq_len, input_size), jnp.float32)

    y = rnn_model_forward(x, params,
                          num_layers=num_layers,
                          hidden_size=hidden_size,
                          output_size=output_size)
    y = jax.block_until_ready(y)

    y_ref = reference_forward(x, params)
    np.testing.assert_allclose(np.asarray(y), np.asarray(y_ref),
                               rtol=1e-4, atol=1e-4)
    print("KERNEL_OK")
</pallas_src>

<mosaic_0001>
module attributes {stable_mosaic.version = 11 : i64} {
  func.func @_rnn_kernel(%arg0: memref<64x128xf32, #tpu.memory_space<vmem>>, %arg1: memref<128x128xf32, #tpu.memory_space<vmem>>, %arg2: memref<128x128xf32, #tpu.memory_space<vmem>>, %arg3: memref<128x128xf32, #tpu.memory_space<vmem>>, %arg4: memref<128x128xf32, #tpu.memory_space<vmem>>, %arg5: memref<1x128xf32, #tpu.memory_space<vmem>>, %arg6: memref<1x128xf32, #tpu.memory_space<vmem>>, %arg7: memref<128x128xf32, #tpu.memory_space<vmem>>, %arg8: memref<1x128xf32, #tpu.memory_space<vmem>>, %arg9: memref<8x128xf32, #tpu.memory_space<vmem>>) attributes {dimension_semantics = [], scalar_prefetch = 0 : i64, scratch_operands = 0 : i64, tpu.core_type = #tpu.core_type<tc>} {
    %c0 = arith.constant 0 : index
    %c0_0 = arith.constant 0 : index
    %0 = vector.load %arg0[%c0, %c0_0] : memref<64x128xf32, #tpu.memory_space<vmem>>, vector<64x128xf32>
    %c0_1 = arith.constant 0 : index
    %c0_2 = arith.constant 0 : index
    %1 = vector.load %arg3[%c0_1, %c0_2] : memref<128x128xf32, #tpu.memory_space<vmem>>, vector<128x128xf32>
    %c0_3 = arith.constant 0 : index
    %c0_4 = arith.constant 0 : index
    %2 = vector.load %arg1[%c0_3, %c0_4] : memref<128x128xf32, #tpu.memory_space<vmem>>, vector<128x128xf32>
    %cst = arith.constant dense<0.000000e+00> : vector<64x128xf32>
    %3 = tpu.matmul %0, %2, %cst {dimension_numbers = #tpu.dot_dimension_numbers<[1], [0], [0], [1], [0, 0, 1, 1], [], []>} : vector<64x128xf32>, vector<128x128xf32>, vector<64x128xf32> -> vector<64x128xf32>
    %c0_5 = arith.constant 0 : index
    %c0_6 = arith.constant 0 : index
    %4 = vector.load %arg5[%c0_5, %c0_6] : memref<1x128xf32, #tpu.memory_space<vmem>>, vector<1x128xf32>
    %5 = vector.broadcast %4 : vector<1x128xf32> to vector<64x128xf32>
    %6 = arith.addf %3, %5 : vector<64x128xf32>
    %cst_7 = arith.constant 0.000000e+00 : f32
    %7 = vector.broadcast %cst_7 : f32 to vector<8x128xf32>
    %8 = vector.extract_strided_slice %6 {offsets = [0, 0], sizes = [8, 128], strides = [1, 1]} : vector<64x128xf32> to vector<8x128xf32>
    %cst_8 = arith.constant dense<0.000000e+00> : vector<8x128xf32>
    %9 = tpu.matmul %7, %1, %cst_8 {dimension_numbers = #tpu.dot_dimension_numbers<[1], [0], [0], [1], [0, 0, 1, 1], [], []>} : vector<8x128xf32>, vector<128x128xf32>, vector<8x128xf32> -> vector<8x128xf32>
    %10 = arith.addf %8, %9 : vector<8x128xf32>
    %11 = math.tanh %10 : vector<8x128xf32>
    %12 = vector.extract_strided_slice %6 {offsets = [8, 0], sizes = [8, 128], strides = [1, 1]} : vector<64x128xf32> to vector<8x128xf32>
    %cst_9 = arith.constant dense<0.000000e+00> : vector<8x128xf32>
    %13 = tpu.matmul %11, %1, %cst_9 {dimension_numbers = #tpu.dot_dimension_numbers<[1], [0], [0], [1], [0, 0, 1, 1], [], []>} : vector<8x128xf32>, vector<128x128xf32>, vector<8x128xf32> -> vector<8x128xf32>
    %14 = arith.addf %12, %13 : vector<8x128xf32>
    %15 = math.tanh %14 : vector<8x128xf32>
    %16 = vector.extract_strided_slice %6 {offsets = [16, 0], sizes = [8, 128], strides = [1, 1]} : vector<64x128xf32> to vector<8x128xf32>
    %cst_10 = arith.constant dense<0.000000e+00> : vector<8x128xf32>
    %17 = tpu.matmul %15, %1, %cst_10 {dimension_numbers = #tpu.dot_dimension_numbers<[1], [0], [0], [1], [0, 0, 1, 1], [], []>} : vector<8x128xf32>, vector<128x128xf32>, vector<8x128xf32> -> vector<8x128xf32>
    %18 = arith.addf %16, %17 : vector<8x128xf32>
    %19 = math.tanh %18 : vector<8x128xf32>
    %20 = vector.extract_strided_slice %6 {offsets = [24, 0], sizes = [8, 128], strides = [1, 1]} : vector<64x128xf32> to vector<8x128xf32>
    %cst_11 = arith.constant dense<0.000000e+00> : vector<8x128xf32>
    %21 = tpu.matmul %19, %1, %cst_11 {dimension_numbers = #tpu.dot_dimension_numbers<[1], [0], [0], [1], [0, 0, 1, 1], [], []>} : vector<8x128xf32>, vector<128x128xf32>, vector<8x128xf32> -> vector<8x128xf32>
    %22 = arith.addf %20, %21 : vector<8x128xf32>
    %23 = math.tanh %22 : vector<8x128xf32>
    %24 = vector.extract_strided_slice %6 {offsets = [32, 0], sizes = [8, 128], strides = [1, 1]} : vector<64x128xf32> to vector<8x128xf32>
    %cst_12 = arith.constant dense<0.000000e+00> : vector<8x128xf32>
    %25 = tpu.matmul %23, %1, %cst_12 {dimension_numbers = #tpu.dot_dimension_numbers<[1], [0], [0], [1], [0, 0, 1, 1], [], []>} : vector<8x128xf32>, vector<128x128xf32>, vector<8x128xf32> -> vector<8x128xf32>
    %26 = arith.addf %24, %25 : vector<8x128xf32>
    %27 = math.tanh %26 : vector<8x128xf32>
    %28 = vector.extract_strided_slice %6 {offsets = [40, 0], sizes = [8, 128], strides = [1, 1]} : vector<64x128xf32> to vector<8x128xf32>
    %cst_13 = arith.constant dense<0.000000e+00> : vector<8x128xf32>
    %29 = tpu.matmul %27, %1, %cst_13 {dimension_numbers = #tpu.dot_dimension_numbers<[1], [0], [0], [1], [0, 0, 1, 1], [], []>} : vector<8x128xf32>, vector<128x128xf32>, vector<8x128xf32> -> vector<8x128xf32>
    %30 = arith.addf %28, %29 : vector<8x128xf32>
    %31 = math.tanh %30 : vector<8x128xf32>
    %32 = vector.extract_strided_slice %6 {offsets = [48, 0], sizes = [8, 128], strides = [1, 1]} : vector<64x128xf32> to vector<8x128xf32>
    %cst_14 = arith.constant dense<0.000000e+00> : vector<8x128xf32>
    %33 = tpu.matmul %31, %1, %cst_14 {dimension_numbers = #tpu.dot_dimension_numbers<[1], [0], [0], [1], [0, 0, 1, 1], [], []>} : vector<8x128xf32>, vector<128x128xf32>, vector<8x128xf32> -> vector<8x128xf32>
    %34 = arith.addf %32, %33 : vector<8x128xf32>
    %35 = math.tanh %34 : vector<8x128xf32>
    %36 = vector.extract_strided_slice %6 {offsets = [56, 0], sizes = [8, 128], strides = [1, 1]} : vector<64x128xf32> to vector<8x128xf32>
    %cst_15 = arith.constant dense<0.000000e+00> : vector<8x128xf32>
    %37 = tpu.matmul %35, %1, %cst_15 {dimension_numbers = #tpu.dot_dimension_numbers<[1], [0], [0], [1], [0, 0, 1, 1], [], []>} : vector<8x128xf32>, vector<128x128xf32>, vector<8x128xf32> -> vector<8x128xf32>
    %38 = arith.addf %36, %37 : vector<8x128xf32>
    %39 = math.tanh %38 : vector<8x128xf32>
    %40 = tpu.concatenate %11, %15, %19, %23, %27, %31, %35, %39 in 0 : vector<8x128xf32>, vector<8x128xf32>, vector<8x128xf32>, vector<8x128xf32>, vector<8x128xf32>, vector<8x128xf32>, vector<8x128xf32>, vector<8x128xf32> -> vector<64x128xf32>
    %c0_16 = arith.constant 0 : index
    %c0_17 = arith.constant 0 : index
    %41 = vector.load %arg4[%c0_16, %c0_17] : memref<128x128xf32, #tpu.memory_space<vmem>>, vector<128x128xf32>
    %c0_18 = arith.constant 0 : index
    %c0_19 = arith.constant 0 : index
    %42 = vector.load %arg2[%c0_18, %c0_19] : memref<128x128xf32, #tpu.memory_space<vmem>>, vector<128x128xf32>
    %cst_20 = arith.constant dense<0.000000e+00> : vector<64x128xf32>
    %43 = tpu.matmul %40, %42, %cst_20 {dimension_numbers = #tpu.dot_dimension_numbers<[1], [0], [0], [1], [0, 0, 1, 1], [], []>} : vector<64x128xf32>, vector<128x128xf32>, vector<64x128xf32> -> vector<64x128xf32>
    %c0_21 = arith.constant 0 : index
    %c0_22 = arith.constant 0 : index
    %44 = vector.load %arg6[%c0_21, %c0_22] : memref<1x128xf32, #tpu.memory_space<vmem>>, vector<1x128xf32>
    %45 = vector.broadcast %44 : vector<1x128xf32> to vector<64x128xf32>
    %46 = arith.addf %43, %45 : vector<64x128xf32>
    %cst_23 = arith.constant 0.000000e+00 : f32
    %47 = vector.broadcast %cst_23 : f32 to vector<8x128xf32>
    %48 = vector.extract_strided_slice %46 {offsets = [0, 0], sizes = [8, 128], strides = [1, 1]} : vector<64x128xf32> to vector<8x128xf32>
    %cst_24 = arith.constant dense<0.000000e+00> : vector<8x128xf32>
    %49 = tpu.matmul %47, %41, %cst_24 {dimension_numbers = #tpu.dot_dimension_numbers<[1], [0], [0], [1], [0, 0, 1, 1], [], []>} : vector<8x128xf32>, vector<128x128xf32>, vector<8x128xf32> -> vector<8x128xf32>
    %50 = arith.addf %48, %49 : vector<8x128xf32>
    %51 = math.tanh %50 : vector<8x128xf32>
    %52 = vector.extract_strided_slice %46 {offsets = [8, 0], sizes = [8, 128], strides = [1, 1]} : vector<64x128xf32> to vector<8x128xf32>
    %cst_25 = arith.constant dense<0.000000e+00> : vector<8x128xf32>
    %53 = tpu.matmul %51, %41, %cst_25 {dimension_numbers = #tpu.dot_dimension_numbers<[1], [0], [0], [1], [0, 0, 1, 1], [], []>} : vector<8x128xf32>, vector<128x128xf32>, vector<8x128xf32> -> vector<8x128xf32>
    %54 = arith.addf %52, %53 : vector<8x128xf32>
    %55 = math.tanh %54 : vector<8x128xf32>
    %56 = vector.extract_strided_slice %46 {offsets = [16, 0], sizes = [8, 128], strides = [1, 1]} : vector<64x128xf32> to vector<8x128xf32>
    %cst_26 = arith.constant dense<0.000000e+00> : vector<8x128xf32>
    %57 = tpu.matmul %55, %41, %cst_26 {dimension_numbers = #tpu.dot_dimension_numbers<[1], [0], [0], [1], [0, 0, 1, 1], [], []>} : vector<8x128xf32>, vector<128x128xf32>, vector<8x128xf32> -> vector<8x128xf32>
    %58 = arith.addf %56, %57 : vector<8x128xf32>
    %59 = math.tanh %58 : vector<8x128xf32>
    %60 = vector.extract_strided_slice %46 {offsets = [24, 0], sizes = [8, 128], strides = [1, 1]} : vector<64x128xf32> to vector<8x128xf32>
    %cst_27 = arith.constant dense<0.000000e+00> : vector<8x128xf32>
    %61 = tpu.matmul %59, %41, %cst_27 {dimension_numbers = #tpu.dot_dimension_numbers<[1], [0], [0], [1], [0, 0, 1, 1], [], []>} : vector<8x128xf32>, vector<128x128xf32>, vector<8x128xf32> -> vector<8x128xf32>
    %62 = arith.addf %60, %61 : vector<8x128xf32>
    %63 = math.tanh %62 : vector<8x128xf32>
    %64 = vector.extract_strided_slice %46 {offsets = [32, 0], sizes = [8, 128], strides = [1, 1]} : vector<64x128xf32> to vector<8x128xf32>
    %cst_28 = arith.constant dense<0.000000e+00> : vector<8x128xf32>
    %65 = tpu.matmul %63, %41, %cst_28 {dimension_numbers = #tpu.dot_dimension_numbers<[1], [0], [0], [1], [0, 0, 1, 1], [], []>} : vector<8x128xf32>, vector<128x128xf32>, vector<8x128xf32> -> vector<8x128xf32>
    %66 = arith.addf %64, %65 : vector<8x128xf32>
    %67 = math.tanh %66 : vector<8x128xf32>
    %68 = vector.extract_strided_slice %46 {offsets = [40, 0], sizes = [8, 128], strides = [1, 1]} : vector<64x128xf32> to vector<8x128xf32>
    %cst_29 = arith.constant dense<0.000000e+00> : vector<8x128xf32>
    %69 = tpu.matmul %67, %41, %cst_29 {dimension_numbers = #tpu.dot_dimension_numbers<[1], [0], [0], [1], [0, 0, 1, 1], [], []>} : vector<8x128xf32>, vector<128x128xf32>, vector<8x128xf32> -> vector<8x128xf32>
    %70 = arith.addf %68, %69 : vector<8x128xf32>
    %71 = math.tanh %70 : vector<8x128xf32>
    %72 = vector.extract_strided_slice %46 {offsets = [48, 0], sizes = [8, 128], strides = [1, 1]} : vector<64x128xf32> to vector<8x128xf32>
    %cst_30 = arith.constant dense<0.000000e+00> : vector<8x128xf32>
    %73 = tpu.matmul %71, %41, %cst_30 {dimension_numbers = #tpu.dot_dimension_numbers<[1], [0], [0], [1], [0, 0, 1, 1], [], []>} : vector<8x128xf32>, vector<128x128xf32>, vector<8x128xf32> -> vector<8x128xf32>
    %74 = arith.addf %72, %73 : vector<8x128xf32>
    %75 = math.tanh %74 : vector<8x128xf32>
    %76 = vector.extract_strided_slice %46 {offsets = [56, 0], sizes = [8, 128], strides = [1, 1]} : vector<64x128xf32> to vector<8x128xf32>
    %cst_31 = arith.constant dense<0.000000e+00> : vector<8x128xf32>
    %77 = tpu.matmul %75, %41, %cst_31 {dimension_numbers = #tpu.dot_dimension_numbers<[1], [0], [0], [1], [0, 0, 1, 1], [], []>} : vector<8x128xf32>, vector<128x128xf32>, vector<8x128xf32> -> vector<8x128xf32>
    %78 = arith.addf %76, %77 : vector<8x128xf32>
    %79 = math.tanh %78 : vector<8x128xf32>
    %c0_32 = arith.constant 0 : index
    %c0_33 = arith.constant 0 : index
    %80 = vector.load %arg7[%c0_32, %c0_33] : memref<128x128xf32, #tpu.memory_space<vmem>>, vector<128x128xf32>
    %cst_34 = arith.constant dense<0.000000e+00> : vector<8x128xf32>
    %81 = tpu.matmul %79, %80, %cst_34 {dimension_numbers = #tpu.dot_dimension_numbers<[1], [0], [0], [1], [0, 0, 1, 1], [], []>} : vector<8x128xf32>, vector<128x128xf32>, vector<8x128xf32> -> vector<8x128xf32>
    %c0_35 = arith.constant 0 : index
    %c0_36 = arith.constant 0 : index
    %82 = vector.load %arg8[%c0_35, %c0_36] : memref<1x128xf32, #tpu.memory_space<vmem>>, vector<1x128xf32>
    %83 = vector.broadcast %82 : vector<1x128xf32> to vector<8x128xf32>
    %84 = arith.addf %81, %83 : vector<8x128xf32>
    %85 = arith.negf %84 : vector<8x128xf32>
    %86 = math.exp %85 : vector<8x128xf32>
    %cst_37 = arith.constant 1.000000e+00 : f32
    %87 = vector.broadcast %cst_37 : f32 to vector<8x128xf32>
    %88 = arith.addf %87, %86 : vector<8x128xf32>
    %89 = arith.divf %87, %88 : vector<8x128xf32>
    %c0_38 = arith.constant 0 : index
    %c0_39 = arith.constant 0 : index
    %90 = vector.load %arg9[%c0_38, %c0_39] : memref<8x128xf32, #tpu.memory_space<vmem>>, vector<8x128xf32>
    tpu.vector_store %arg9[%c0_38, %c0_39], %89 {strides = array<i32>} : memref<8x128xf32, #tpu.memory_space<vmem>>, vector<8x128xf32>,
    return
  }
}

</mosaic_0001>

<bundles_post_ra>
// kernel: tpu_custom_call.1
= control target key start
LH: loop header
LB: loop body
LE: loop exit
PB: predicated region body
PF: predicated region fallthrough
CT: control target
= control target key end

     0   :  { %14 = vsyncpa [#allocation3], 0  ;;  %s3988_s0 = inlined_call_operand.hbm [shape: f32[64,128], index: 0, kind: input, shape index: {}]   ;;  %s3989_s1 = inlined_call_operand.hbm [shape: f32[128,128], index: 1, kind: input, shape index: {}]   ;;  %s3990_s2 = inlined_call_operand.hbm [shape: f32[128,128], index: 2, kind: input, shape index: {}]   ;;  %s3991_s3 = inlined_call_operand.hbm [shape: f32[128,128], index: 3, kind: input, shape index: {}]   ;;  %s3992_s4 = inlined_call_operand.hbm [shape: f32[128,128], index: 4, kind: input, shape index: {}]   ;;  %s3993_s5 = inlined_call_operand.vmem [shape: f32[1,128], index: 5, kind: input, shape index: {}]   ;;  %s3994_s6 = inlined_call_operand.vmem [shape: f32[1,128], index: 6, kind: input, shape index: {}]   ;;  %s3995_s7 = inlined_call_operand.hbm [shape: f32[128,128], index: 7, kind: input, shape index: {}]   ;;  %s3996_s8 = inlined_call_operand.vmem [shape: f32[1,128], index: 8, kind: input, shape index: {}]   ;;  %s3997_s9 = inlined_call_operand.hbm [shape: f32[8,128], index: 9, kind: output, shape index: {}]  }
   0x1   :  { %15 = vsyncpa [#allocation6], 0 }
   0x2   :  { %16 = vsyncpa [#allocation9], 0 }
   0x3   :  { %17 = vsyncpa [#allocation12], 0 }
   0x4   :  { %18 = vsyncpa [#allocation4], 0  ;;  %s3389_s30 = smov [#allocation5]   ;;  %s3390_s11 = smov [#allocation8]  }
   0x5   :  { %s36_s10 = sshll.u32 %s3389_s30, 4  ;;  %s60_s12 = sshll.u32 %s3390_s11, 4  ;;  %s37_s10 = int_to_ptr.vmem [resolvable:$true] %s36_s10  ;;  %s3451_s12 = int_to_ptr.vmem [resolvable:$true] %s60_s12 }
   0x6   :  { %s3225_s15 = scalar_lea.hbm %s3989_s1, 2048 }
   0x7   :  { %p3226_p0 = scmp.ne.s32.totalorder %s3989_s1, %s3225_s15  ;;  %p3229_p1 = scmp.lt.u32.totalorder %s3225_s15, %s3989_s1 }
   0x9   :  { %p3231_p2 = pnand %p3229_p1, %p3226_p0 }
   0xb   :  { %3234 = shalt.err (!%p3231_p2)
}
   0xc   :  { %s3235_s20 = scalar_lea.vmem %s37_s10, 2048  ;;  %p3240_p4 = scmp.lt.s32.totalorder %s37_s10, %s37_s10 }
   0xd   :  { %p3236_p3 = scmp.ne.s32.totalorder %s37_s10, %s3235_s20  ;;  %p3241_p5 = scmp.lt.s32.totalorder %s3235_s20, %s3235_s20 }
   0xf   :  { %p3242_p6 = por %p3241_p5, %p3240_p4 }
  0x11   :  { %p3243_p7 = pnand %p3242_p6, %p3236_p3 }
  0x13   :  { %3246 = shalt.err (!%p3243_p7)
}
  0x14   :  { %s3391_s21 = smov 128   ;;  %s3392_s22 = smov 8  }
  0x15   :  { %42 = dma.hbm_to_vmem [thread:$0]  %s3989_s1, 2048, %s37_s10, [#allocation6], %s3391_s21, %s3391_s21, %s3392_s22  }
  0x16   :  { %s3247_s27 = scalar_lea.hbm %s3991_s3, 2048 }
  0x17   :  { %p3248_p8 = scmp.ne.s32.totalorder %s3991_s3, %s3247_s27  ;;  %p3251_p9 = scmp.lt.u32.totalorder %s3247_s27, %s3991_s3 }
  0x19   :  { %p3253_p10 = pnand %p3251_p9, %p3248_p8 }
  0x1b   :  { %3256 = shalt.err (!%p3253_p10)
}
  0x1c   :  { %s3257_s13 = scalar_lea.vmem %s3451_s12, 2048  ;;  %p3262_p12 = scmp.lt.s32.totalorder %s3451_s12, %s3451_s12 }
  0x1d   :  { %p3258_p11 = scmp.ne.s32.totalorder %s3451_s12, %s3257_s13  ;;  %p3263_p13 = scmp.lt.s32.totalorder %s3257_s13, %s3257_s13 }
  0x1f   :  { %p3264_p0 = por %p3263_p13, %p3262_p12 }
  0x21   :  { %p3265_p1 = pnand %p3264_p0, %p3258_p11 }
  0x23   :  { %3268 = shalt.err (!%p3265_p1)
}
  0x24   :  { %66 = dma.hbm_to_vmem [thread:$0]  %s3991_s3, 2048, %s3451_s12, [#allocation9], %s3391_s21, %s3391_s21, %s3392_s22  }
  0x25   :  { %s3393_s14 = smov [#allocation2]   ;;  %s3394_s16 = smov [#allocation7]  }
  0x26   :  { %s24_s15 = sshll.u32 %s3393_s14, 4  ;;  %s48_s17 = sshll.u32 %s3394_s16, 4  ;;  %s25_s15 = int_to_ptr.vmem [resolvable:$true] %s24_s15  ;;  %s3488_s17 = int_to_ptr.vmem [resolvable:$true] %s48_s17 }
  0x27   :  { %s3269_s20 = scalar_lea.hbm %s3988_s0, 1024 }
  0x28   :  { %p3270_p2 = scmp.ne.s32.totalorder %s3988_s0, %s3269_s20  ;;  %p3273_p3 = scmp.lt.u32.totalorder %s3269_s20, %s3988_s0 }
  0x2a   :  { %p3275_p4 = pnand %p3273_p3, %p3270_p2 }
  0x2c   :  { %3278 = shalt.err (!%p3275_p4)
}
  0x2d   :  { %s3279_s3 = scalar_lea.vmem %s25_s15, 1024  ;;  %p3284_p6 = scmp.lt.s32.totalorder %s25_s15, %s25_s15 }
  0x2e   :  { %p3280_p5 = scmp.ne.s32.totalorder %s25_s15, %s3279_s3  ;;  %p3285_p7 = scmp.lt.s32.totalorder %s3279_s3, %s3279_s3 }
  0x30   :  { %p3286_p8 = por %p3285_p7, %p3284_p6 }
  0x32   :  { %p3287_p9 = pnand %p3286_p8, %p3280_p5 }
  0x34   :  { %3290 = shalt.err (!%p3287_p9)
}
  0x35   :  { %30 = dma.hbm_to_vmem [thread:$0]  %s3988_s0, 1024, %s25_s15, [#allocation3], %s3391_s21, %s3391_s21, %s3392_s22  }
  0x36   :  { %s3291_s30 = scalar_lea.hbm %s3990_s2, 2048 }
  0x37   :  { %p3292_p10 = scmp.ne.s32.totalorder %s3990_s2, %s3291_s30  ;;  %p3295_p11 = scmp.lt.u32.totalorder %s3291_s30, %s3990_s2 }
  0x39   :  { %p3297_p12 = pnand %p3295_p11, %p3292_p10 }
  0x3b   :  { %3300 = shalt.err (!%p3297_p12)
}
  0x3c   :  { %s3301_s14 = scalar_lea.vmem %s3488_s17, 2048  ;;  %p3306_p0 = scmp.lt.s32.totalorder %s3488_s17, %s3488_s17 }
  0x3d   :  { %p3302_p13 = scmp.ne.s32.totalorder %s3488_s17, %s3301_s14  ;;  %p3307_p1 = scmp.lt.s32.totalorder %s3301_s14, %s3301_s14 }
  0x3f   :  { %p3308_p2 = por %p3307_p1, %p3306_p0 }
  0x41   :  { %p3309_p3 = pnand %p3308_p2, %p3302_p13 }
  0x43   :  { %3312 = shalt.err (!%p3309_p3)
}
  0x44   :  { %54 = dma.hbm_to_vmem [thread:$0]  %s3990_s2, 2048, %s3488_s17, [#allocation6], %s3391_s21, %s3391_s21, %s3392_s22  }
  0x45   :  { %s3395_s16 = smov [#allocation10]   ;;  %s3396_s19 = smov [#allocation11]  }
  0x46   :  { %s72_s18 = sshll.u32 %s3395_s16, 4  ;;  %s88_s20 = sshll.u32 %s3396_s19, 4  ;;  %s73_s18 = int_to_ptr.vmem [resolvable:$true] %s72_s18  ;;  %s3525_s20 = int_to_ptr.vmem [resolvable:$true] %s88_s20 }
  0x47   :  { %s3313_s25 = scalar_lea.hbm %s3992_s4, 2048 }
  0x48   :  { %p3314_p4 = scmp.ne.s32.totalorder %s3992_s4, %s3313_s25  ;;  %p3317_p5 = scmp.lt.u32.totalorder %s3313_s25, %s3992_s4 }
  0x4a   :  { %p3319_p6 = pnand %p3317_p5, %p3314_p4 }
  0x4c   :  { %3322 = shalt.err (!%p3319_p6)
}
  0x4d   :  { %s3323_s2 = scalar_lea.vmem %s73_s18, 2048  ;;  %p3328_p8 = scmp.lt.s32.totalorder %s73_s18, %s73_s18 }
  0x4e   :  { %p3324_p7 = scmp.ne.s32.totalorder %s73_s18, %s3323_s2  ;;  %p3329_p9 = scmp.lt.s32.totalorder %s3323_s2, %s3323_s2 }
  0x50   :  { %p3330_p10 = por %p3329_p9, %p3328_p8 }
  0x52   :  { %p3331_p11 = pnand %p3330_p10, %p3324_p7 }
  0x54   :  { %3334 = shalt.err (!%p3331_p11)
}
  0x55   :  { %78 = dma.hbm_to_vmem [thread:$0]  %s3992_s4, 2048, %s73_s18, [#allocation9], %s3391_s21, %s3391_s21, %s3392_s22  }
  0x56   :  { %s3335_s11 = scalar_lea.hbm %s3995_s7, 2048 }
  0x57   :  { %p3336_p12 = scmp.ne.s32.totalorder %s3995_s7, %s3335_s11  ;;  %p3339_p13 = scmp.lt.u32.totalorder %s3335_s11, %s3995_s7 }
  0x59   :  { %p3341_p0 = pnand %p3339_p13, %p3336_p12 }
  0x5b   :  { %3344 = shalt.err (!%p3341_p0)
}
  0x5c   :  { %s3345_s0 = scalar_lea.vmem %s3525_s20, 2048  ;;  %p3350_p2 = scmp.lt.s32.totalorder %s3525_s20, %s3525_s20 }
  0x5d   :  { %p3346_p1 = scmp.ne.s32.totalorder %s3525_s20, %s3345_s0  ;;  %p3351_p3 = scmp.lt.s32.totalorder %s3345_s0, %s3345_s0 }
  0x5f   :  { %p3352_p4 = por %p3351_p3, %p3350_p2 }
  0x61   :  { %p3353_p5 = pnand %p3352_p4, %p3346_p1 }
  0x63   :  { %3356 = shalt.err (!%p3353_p5)
}
  0x64   :  { %94 = dma.hbm_to_vmem [thread:$0]  %s3995_s7, 2048, %s3525_s20, [#allocation12], %s3391_s21, %s3391_s21, %s3392_s22  }
  0x65   :  { %3379 = dma.done.wait [#allocation3], 1024  }
  0x66   :  { %3380 = vsyncadd [#allocation3], 4294966272 }
  0x67   :  { %3381 = dma.done.wait [#allocation6], 4096  }
  0x68   :  { %3382 = vsyncadd [#allocation6], 4294963200 }
  0x69   :  { %3383 = dma.done.wait [#allocation9], 4096  }
  0x6a   :  { %3384 = vsyncadd [#allocation9], 4294963200 }
  0x6b   :  { %3385 = dma.done.wait [#allocation12], 2048  }
  0x6c   :  { %3386 = vsyncadd [#allocation12], 4294965248  ;;  %v3397_v0 = vmov 0.0|0.0   ;;  %vm3398_vm0 = vmmov 0   ;;  %v3399_v1 = vmov 0.0   ;;  %v139_v2 = vld [vmem:[#allocation5] sm:$0xff] }
  0x6d   :  { %2737 = vmatprep.subr.bf16.mxu1 %v3397_v0  ;;  %2098 = vmatprep.mubr.msk.f32.mxu1 %vm3398_vm0, %v3399_v1  ;;  %v140_v3 = vld [vmem:[#allocation5 + $0x8] sm:$0xff]  ;;  %v123_v4 = vld [vmem:[#allocation8] sm:$0xff]  ;;  %v141_v7 = vld [vmem:[#allocation5 + $0x10] sm:$0xff]  ;;  %s3400_s18 = smov [#allocation13]  }
  0x6e   :  { %v2705_v5 = vpack.c.bf16 %v140_v3, %v139_v2  ;;  %v124_v6 = vld [vmem:[#allocation8 + $0x8] sm:$0xff]  ;;  %v142_v8 = vld [vmem:[#allocation5 + $0x18] sm:$0xff]  ;;  %v125_v11 = vld [vmem:[#allocation8 + $0x10] sm:$0xff]  ;;  %s1669_s19 = sshll.u32 %s3400_s18, 4  ;;  %s1670_s19 = int_to_ptr.vmem [resolvable:$true] %s1669_s19 }
  0x6f   :  { %v3565_v9 = vpack.c.bf16 %v124_v6, %v123_v4  ;;  %v2709_v10 = vpack.c.bf16 %v142_v8, %v141_v7  ;;  %v126_v12 = vld [vmem:[#allocation8 + $0x18] sm:$0xff]  ;;  %v143_v13 = vld [vmem:[#allocation5 + $0x20] sm:$0xff]  ;;  %v144_v14 = vld [vmem:[#allocation5 + $0x28] sm:$0xff]  ;;  %s3357_s20 = scalar_lea.vmem %s1670_s19, 128  ;;  %p3362_p7 = scmp.lt.s32.totalorder %s1670_s19, %s1670_s19 }
  0x70   :  { %2706 = vmatprep.subr.bf16.mxu0 %v2705_v5  ;;  %v3568_v15 = vpack.c.bf16 %v126_v12, %v125_v11  ;;  %v2713_v16 = vpack.c.bf16 %v144_v14, %v143_v13  ;;  %v127_v17 = vld [vmem:[#allocation8 + $0x20] sm:$0xff]  ;;  %v128_v18 = vld [vmem:[#allocation8 + $0x28] sm:$0xff]  ;;  %v145_v19 = vld [vmem:[#allocation5 + $0x30] sm:$0xff]  ;;  %p3358_p6 = scmp.ne.s32.totalorder %s1670_s19, %s3357_s20  ;;  %p3363_p8 = scmp.lt.s32.totalorder %s3357_s20, %s3357_s20 }
  0x71   :  { %2708 = vmatpush3.bf16.msra.mxu0 %v2705_v5  ;;  %2739 = vmatpush3.bf16.msra.mxu1 %v3565_v9  ;;  %v146_v20 = vld [vmem:[#allocation5 + $0x38] sm:$0xff]  ;;  %v3572_v21 = vpack.c.bf16 %v128_v18, %v127_v17  ;;  %v129_v23 = vld [vmem:[#allocation8 + $0x30] sm:$0xff]  ;;  %v147_v25 = vld [vmem:[#allocation5 + $0x40] sm:$0xff] }
  0x72   :  { %2710 = vmatprep.subr.bf16.mxu0 %v2709_v10  ;;  %2740 = vmatprep.subr.bf16.mxu1 %v3397_v0  ;;  %v2717_v22 = vpack.c.bf16 %v146_v20, %v145_v19  ;;  %v130_v24 = vld [vmem:[#allocation8 + $0x38] sm:$0xff]  ;;  %v148_v26 = vld [vmem:[#allocation5 + $0x48] sm:$0xff]  ;;  %v115_v27 = vld [vmem:[#allocation2] sm:$0xff]  ;;  %p3364_p9 = por %p3363_p8, %p3362_p7 }
  0x73   :  { %2054 = vmatprep.mubr.f32.mxu0 %v115_v27  ;;  %v3576_v28 = vpack.c.bf16 %v130_v24, %v129_v23  ;;  %v2721_v29 = vpack.c.bf16 %v148_v26, %v147_v25  ;;  %v131_v30 = vld [vmem:[#allocation8 + $0x40] sm:$0xff]  ;;  %v132_v31 = vld [vmem:[#allocation8 + $0x48] sm:$0xff]  ;;  %v149_v32 = vld [vmem:[#allocation5 + $0x50] sm:$0xff] }
  0x74   :  { %v150_v33 = vld [vmem:[#allocation5 + $0x58] sm:$0xff]  ;;  %v3580_v34 = vpack.c.bf16 %v132_v31, %v131_v30  ;;  %v133_v36 = vld [vmem:[#allocation8 + $0x50] sm:$0xff]  ;;  %v151_v38 = vld [vmem:[#allocation5 + $0x60] sm:$0xff]  ;;  %p3365_p10 = pnand %p3364_p9, %p3358_p6 }
  0x75   :  { %2712 = vmatpush3.bf16.msra.mxu0 %v2709_v10  ;;  %2742 = vmatpush3.bf16.msra.mxu1 %v3568_v15  ;;  %v2725_v35 = vpack.c.bf16 %v150_v33, %v149_v32  ;;  %v134_v37 = vld [vmem:[#allocation8 + $0x58] sm:$0xff]  ;;  %v152_v39 = vld [vmem:[#allocation5 + $0x68] sm:$0xff]  ;;  %v135_v42 = vld [vmem:[#allocation8 + $0x60] sm:$0xff] }
  0x76   :  { %2714 = vmatprep.subr.bf16.mxu0 %v2713_v16  ;;  %2743 = vmatprep.subr.bf16.mxu1 %v3397_v0  ;;  %v3584_v40 = vpack.c.bf16 %v134_v37, %v133_v36  ;;  %v2729_v41 = vpack.c.bf16 %v152_v39, %v151_v38  ;;  %v136_v43 = vld [vmem:[#allocation8 + $0x68] sm:$0xff]  ;;  %v153_v44 = vld [vmem:[#allocation5 + $0x70] sm:$0xff]  ;;  %v154_v45 = vld [vmem:[#allocation5 + $0x78] sm:$0xff] }
  0x77   :  { %v3588_v46 = vpack.c.bf16 %v136_v43, %v135_v42  ;;  %v2733_v47 = vpack.c.bf16 %v154_v45, %v153_v44  ;;  %v137_v48 = vld [vmem:[#allocation8 + $0x70] sm:$0xff]  ;;  %v138_v49 = vld [vmem:[#allocation8 + $0x78] sm:$0xff]  ;;  %v116_v51 = vld [vmem:[#allocation2 + $0x8] sm:$0xff] }
  0x78   :  { %v3592_v50 = vpack.c.bf16 %v138_v49, %v137_v48  ;;  %v117_v52 = vld [vmem:[#allocation2 + $0x10] sm:$0xff]  ;;  %v118_v53 = vld [vmem:[#allocation2 + $0x18] sm:$0xff]  ;;  %v119_v54 = vld [vmem:[#allocation2 + $0x20] sm:$0xff] }
  0x79   :  { %2716 = vmatpush3.bf16.msra.mxu0 %v2713_v16  ;;  %2745 = vmatpush3.bf16.msra.mxu1 %v3572_v21  ;;  %v120_v55 = vld [vmem:[#allocation2 + $0x28] sm:$0xff]  ;;  %v121_v56 = vld [vmem:[#allocation2 + $0x30] sm:$0xff]  ;;  %v122_v57 = vld [vmem:[#allocation2 + $0x38] sm:$0xff] }
  0x7a   :  { %2718 = vmatprep.subr.bf16.mxu0 %v2717_v22  ;;  %2746 = vmatprep.subr.bf16.mxu1 %v3397_v0  ;;  %v3638_v58 = vld [vmem:[%s3993_s5] ss:$0 sm:$0xff]  ;;  %v861_v37 = vld [vmem:[#allocation7 + $0x10] sm:$0xff]  ;;  %v862_v38 = vld [vmem:[#allocation7 + $0x18] sm:$0xff] }
  0x7b   :  { %v2933_v39 = vpack.c.bf16 %v862_v38, %v861_v37  ;;  %v864_v42 = vld [vmem:[#allocation7 + $0x28] sm:$0xff]  ;;  %v865_v44 = vld [vmem:[#allocation7 + $0x30] sm:$0xff]  ;;  %v866_v45 = vld [vmem:[#allocation7 + $0x38] sm:$0xff] }
  0x7c   :  { %v868_v48 = vld [vmem:[#allocation7 + $0x48] sm:$0xff] }
  0x7d   :  { %2720 = vmatpush3.bf16.msra.mxu0 %v2717_v22  ;;  %2748 = vmatpush3.bf16.msra.mxu1 %v3576_v28 }
  0x7e   :  { %2722 = vmatprep.subr.bf16.mxu0 %v2721_v29  ;;  %2749 = vmatprep.subr.bf16.mxu1 %v3397_v0 }
  0x81   :  { %2724 = vmatpush3.bf16.msra.mxu0 %v2721_v29  ;;  %2751 = vmatpush3.bf16.msra.mxu1 %v3580_v34 }
  0x82   :  { %2726 = vmatprep.subr.bf16.mxu0 %v2725_v35  ;;  %2752 = vmatprep.subr.bf16.mxu1 %v3397_v0 }
  0x85   :  { %2728 = vmatpush3.bf16.msra.mxu0 %v2725_v35  ;;  %2754 = vmatpush3.bf16.msra.mxu1 %v3584_v40 }
  0x86   :  { %2730 = vmatprep.subr.bf16.mxu0 %v2729_v41  ;;  %2755 = vmatprep.subr.bf16.mxu1 %v3397_v0 }
  0x89   :  { %2732 = vmatpush3.bf16.msra.mxu0 %v2729_v41  ;;  %2757 = vmatpush3.bf16.msra.mxu1 %v3588_v46  ;;  %v863_v41 = vld [vmem:[#allocation7 + $0x20] sm:$0xff] }
  0x8a   :  { %2734 = vmatprep.subr.bf16.mxu0 %v2733_v47  ;;  %2758 = vmatprep.subr.bf16.mxu1 %v3397_v0  ;;  %v2937_v43 = vpack.c.bf16 %v864_v42, %v863_v41 }
  0x8d   :  { %2736 = vmatpush3.bf16.msra.mxu0 %v2733_v47  ;;  %2760 = vmatpush3.bf16.msra.mxu1 %v3592_v50  ;;  %v867_v47 = vld [vmem:[#allocation7 + $0x40] sm:$0xff] }
  0x8e   :  { %2761 = vmatprep.subr.bf16.mxu0 %v3397_v0  ;;  %2785 = vmatprep.subr.bf16.mxu1 %v3397_v0  ;;  %v2945_v49 = vpack.c.bf16 %v868_v48, %v867_v47 }
  0x90   :  { %2055 = vmatmul.mubr.f32.vlgmr.msra.gmra.mrb[0].mxu0 %v116_v51  ;;  %2099 = vmatmul.mubr.f32.vlgmr.msra.gmra.mrb[0].mxu1 %v3399_v1  ;;  %v870_v51 = vld [vmem:[#allocation7 + $0x58] sm:$0xff] }
  0x91   :  { %2763 = vmatpush3.bf16.msra.mxu0 %v3565_v9  ;;  %2787 = vmatpush3.bf16.msra.mxu1 %v3565_v9 }
  0x92   :  { %2764 = vmatprep.subr.bf16.mxu0 %v3397_v0  ;;  %2788 = vmatprep.subr.bf16.mxu1 %v3397_v0 }
  0x93   :  { %2168 = vmatprep.mubr.msk.f32.mxu1 %vm3398_vm0, %v3399_v1  ;;  %2057 = vmatprep.mubr.f32.mxu0 %v117_v52 }
  0x94   :  { %2058 = vmatmul.mubr.f32.gmra.mrb[2].mxu0 %v118_v53  ;;  %v871_v53 = vld [vmem:[#allocation7 + $0x60] sm:$0xff] }
  0x95   :  { %2766 = vmatpush3.bf16.msra.mxu0 %v3568_v15  ;;  %2790 = vmatpush3.bf16.msra.mxu1 %v3568_v15 }
  0x96   :  { %2767 = vmatprep.subr.bf16.mxu0 %v3397_v0  ;;  %2791 = vmatprep.subr.bf16.mxu1 %v3397_v0 }
  0x97   :  { %2060 = vmatprep.mubr.f32.mxu0 %v119_v54  ;;  %v872_v54 = vld [vmem:[#allocation7 + $0x68] sm:$0xff] }
  0x98   :  { %2061 = vmatmul.mubr.f32.gmra.mrb[4].mxu0 %v120_v55  ;;  %v2953_v55 = vpack.c.bf16 %v872_v54, %v871_v53 }
  0x99   :  { %2769 = vmatpush3.bf16.msra.mxu0 %v3572_v21  ;;  %2793 = vmatpush3.bf16.msra.mxu1 %v3572_v21 }
  0x9a   :  { %2770 = vmatprep.subr.bf16.mxu0 %v3397_v0  ;;  %2794 = vmatprep.subr.bf16.mxu1 %v3397_v0 }
  0x9b   :  { %2063 = vmatprep.mubr.f32.mxu0 %v121_v56  ;;  %v873_v56 = vld [vmem:[#allocation7 + $0x70] sm:$0xff] }
  0x9c   :  { %2064 = vmatmul.mubr.f32.gmra.mrb[6].mxu0 %v122_v57  ;;  %v874_v57 = vld [vmem:[#allocation7 + $0x78] sm:$0xff] }
  0x9d   :  { %2772 = vmatpush3.bf16.msra.mxu0 %v3576_v28  ;;  %2796 = vmatpush3.bf16.msra.mxu1 %v3576_v28 }
  0x9e   :  { %2773 = vmatprep.subr.bf16.mxu0 %v3397_v0  ;;  %2797 = vmatprep.subr.bf16.mxu1 %v3397_v0 }
  0x9f   :  { %2133 = vmatprep.mubr.msk.f32.mxu0 %vm3398_vm0, %v3399_v1 }
  0xa1   :  { %2775 = vmatpush3.bf16.msra.mxu0 %v3580_v34  ;;  %2799 = vmatpush3.bf16.msra.mxu1 %v3580_v34 }
  0xa2   :  { %2776 = vmatprep.subr.bf16.mxu0 %v3397_v0  ;;  %2800 = vmatprep.subr.bf16.mxu1 %v3397_v0 }
  0xa5   :  { %2778 = vmatpush3.bf16.msra.mxu0 %v3584_v40  ;;  %2802 = vmatpush3.bf16.msra.mxu1 %v3584_v40 }
  0xa6   :  { %2779 = vmatprep.subr.bf16.mxu0 %v3397_v0  ;;  %2803 = vmatprep.subr.bf16.mxu1 %v3397_v0 }
  0xa9   :  { %2781 = vmatpush3.bf16.msra.mxu0 %v3588_v46  ;;  %2805 = vmatpush3.bf16.msra.mxu1 %v3588_v46 }
  0xaa   :  { %2782 = vmatprep.subr.bf16.mxu0 %v3397_v0  ;;  %2806 = vmatprep.subr.bf16.mxu1 %v3397_v0 }
  0xad   :  { %2784 = vmatpush3.bf16.msra.mxu0 %v3592_v50  ;;  %2808 = vmatpush3.bf16.msra.mxu1 %v3592_v50 }
  0xae   :  { %2809 = vmatprep.subr.bf16.mxu0 %v3397_v0  ;;  %2833 = vmatprep.subr.bf16.mxu1 %v3397_v0 }
 0x163   :  { %v2056_v59 = vpop.f32.mrb[0].mxu0  ;;  %v333_v60 = vpop.f32.mrb[0].mxu1 }
 0x164   :  { %v228_v61 = vpop.f32.mrb[1].mxu0  ;;  %v2100_v62 = vpop.f32.mrb[1].mxu1  ;;  %v234_v11 = vadd.f32 %v2056_v59, %v3638_v58  ;;  %v2957_v59 = vpack.c.bf16 %v874_v57, %v873_v56 }
 0x165   :  { %v229_v63 = vadd.f32 %v3638_v58, %v228_v61  ;;  %v844_v61 = vld [vmem:[#allocation10 + $0x8] sm:$0xff] }
 0x167   :  { %v337_v2 = vadd.f32 %v333_v60, %v229_v63  ;;  %v2059_v4 = vpop.f32.mrb[2].mxu0  ;;  %v843_v60 = vld [vmem:[#allocation10] sm:$0xff]  ;;  %v845_v63 = vld [vmem:[#allocation10 + $0x10] sm:$0xff] }
 0x168   :  { %v238_v5 = vpop.f32.mrb[3].mxu0  ;;  %v244_v23 = vadd.f32 %v2059_v4, %v3638_v58  ;;  %v3766_v62 = vpack.c.bf16 %v844_v61, %v843_v60  ;;  %v847_v4 = vld [vmem:[#allocation10 + $0x20] sm:$0xff] }
 0x169   :  { %3189 = vtanh.f32 %v337_v2  ;;  %v239_v17 = vadd.f32 %v3638_v58, %v238_v5  ;;  %v846_v2 = vld [vmem:[#allocation10 + $0x18] sm:$0xff]  ;;  %v848_v5 = vld [vmem:[#allocation10 + $0x28] sm:$0xff] }
 0x16b   :  { %v3662_v6 = vpop.f32.mrb[4].mxu0 }
 0x16c   :  { %v3664_v7 = vpop.f32.mrb[5].mxu0 }
 0x16d   :  { %v249_v29 = vadd.f32 %v3638_v58, %v3664_v7  ;;  %v849_v7 = vld [vmem:[#allocation10 + $0x30] sm:$0xff] }
 0x16f   :  { %v3666_v8 = vpop.f32.mrb[6].mxu0 }
 0x170   :  { %v3668_v10 = vpop.f32.mrb[7].mxu0 }
 0x173   :  { %v3641_v3 = vpop.eup %3189 }
 0x174   :  { %2134 = vmatmul.mubr.f32.vlgmr.msra.gmra.mrb[8].mxu0 %v3641_v3 }
 0x175   :  { %2811 = vmatpush3.bf16.msra.mxu0 %v3565_v9  ;;  %2203 = vmatprep.mubr.msk.f32.mxu0 %vm3398_vm0, %v3399_v1 }
 0x176   :  { %2812 = vmatprep.subr.bf16.mxu0 %v3397_v0 }
 0x179   :  { %2814 = vmatpush3.bf16.msra.mxu0 %v3568_v15 }
 0x17a   :  { %2815 = vmatprep.subr.bf16.mxu0 %v3397_v0 }
 0x17d   :  { %2817 = vmatpush3.bf16.msra.mxu0 %v3572_v21 }
 0x17e   :  { %2818 = vmatprep.subr.bf16.mxu0 %v3397_v0 }
 0x181   :  { %2820 = vmatpush3.bf16.msra.mxu0 %v3576_v28 }
 0x182   :  { %2821 = vmatprep.subr.bf16.mxu0 %v3397_v0 }
 0x185   :  { %2823 = vmatpush3.bf16.msra.mxu0 %v3580_v34 }
 0x186   :  { %2824 = vmatprep.subr.bf16.mxu0 %v3397_v0 }
 0x189   :  { %2826 = vmatpush3.bf16.msra.mxu0 %v3584_v40 }
 0x18a   :  { %2827 = vmatprep.subr.bf16.mxu0 %v3397_v0 }
 0x18d   :  { %2829 = vmatpush3.bf16.msra.mxu0 %v3588_v46 }
 0x18e   :  { %2830 = vmatprep.subr.bf16.mxu0 %v3397_v0 }
 0x191   :  { %2832 = vmatpush3.bf16.msra.mxu0 %v3592_v50 }
 0x192   :  { %2857 = vmatprep.subr.bf16.mxu0 %v3397_v0 }
 0x247   :  { %v405_v12 = vpop.f32.mrb[8].mxu0 }
 0x248   :  { %v409_v13 = vadd.f32 %v405_v12, %v234_v11  ;;  %v2135_v14 = vpop.f32.mrb[9].mxu0  ;;  %v850_v11 = vld [vmem:[#allocation10 + $0x38] sm:$0xff] }
 0x249   :  { %v3778_v12 = vpack.c.bf16 %v850_v11, %v849_v7  ;;  %v852_v14 = vld [vmem:[#allocation10 + $0x48] sm:$0xff] }
 0x24a   :  { %3191 = vtanh.f32 %v409_v13  ;;  %v851_v13 = vld [vmem:[#allocation10 + $0x40] sm:$0xff] }
 0x254   :  { %v3671_v16 = vpop.eup %3191 }
 0x255   :  { %2169 = vmatmul.mubr.f32.vlgmr.msra.gmra.mrb[2].mxu1 %v3671_v16 }
 0x256   :  { %2835 = vmatpush3.bf16.msra.mxu1 %v3565_v9  ;;  %2238 = vmatprep.mubr.msk.f32.mxu1 %vm3398_vm0, %v3399_v1 }
 0x257   :  { %2836 = vmatprep.subr.bf16.mxu1 %v3397_v0 }
 0x25a   :  { %2838 = vmatpush3.bf16.msra.mxu1 %v3568_v15 }
 0x25b   :  { %2839 = vmatprep.subr.bf16.mxu1 %v3397_v0 }
 0x25e   :  { %2841 = vmatpush3.bf16.msra.mxu1 %v3572_v21 }
 0x25f   :  { %2842 = vmatprep.subr.bf16.mxu1 %v3397_v0 }
 0x262   :  { %2844 = vmatpush3.bf16.msra.mxu1 %v3576_v28 }
 0x263   :  { %2845 = vmatprep.subr.bf16.mxu1 %v3397_v0 }
 0x266   :  { %2847 = vmatpush3.bf16.msra.mxu1 %v3580_v34 }
 0x267   :  { %2848 = vmatprep.subr.bf16.mxu1 %v3397_v0 }
 0x26a   :  { %2850 = vmatpush3.bf16.msra.mxu1 %v3584_v40 }
 0x26b   :  { %2851 = vmatprep.subr.bf16.mxu1 %v3397_v0 }
 0x26e   :  { %2853 = vmatpush3.bf16.msra.mxu1 %v3588_v46 }
 0x26f   :  { %2854 = vmatprep.subr.bf16.mxu1 %v3397_v0 }
 0x272   :  { %2856 = vmatpush3.bf16.msra.mxu1 %v3592_v50 }
 0x273   :  { %2881 = vmatprep.subr.bf16.mxu1 %v3397_v0 }
 0x328   :  { %v477_v18 = vpop.f32.mrb[2].mxu1 }
 0x329   :  { %v481_v19 = vadd.f32 %v477_v18, %v239_v17  ;;  %v2170_v20 = vpop.f32.mrb[3].mxu1  ;;  %v853_v17 = vld [vmem:[#allocation10 + $0x50] sm:$0xff]  ;;  %v854_v18 = vld [vmem:[#allocation10 + $0x58] sm:$0xff] }
 0x32a   :  { %v855_v20 = vld [vmem:[#allocation10 + $0x60] sm:$0xff] }
 0x32b   :  { %3193 = vtanh.f32 %v481_v19  ;;  %v3786_v19 = vpack.c.bf16 %v854_v18, %v853_v17  ;;  %v1566_v17 = vld [vmem:[#allocation11 + $0x18] sm:$0xff] }
 0x335   :  { %v3693_v22 = vpop.eup %3193 }
 0x336   :  { %2204 = vmatmul.mubr.f32.vlgmr.msra.gmra.mrb[10].mxu0 %v3693_v22 }
 0x337   :  { %2859 = vmatpush3.bf16.msra.mxu0 %v3565_v9  ;;  %2273 = vmatprep.mubr.msk.f32.mxu0 %vm3398_vm0, %v3399_v1 }
 0x338   :  { %2860 = vmatprep.subr.bf16.mxu0 %v3397_v0 }
 0x33b   :  { %2862 = vmatpush3.bf16.msra.mxu0 %v3568_v15 }
 0x33c   :  { %2863 = vmatprep.subr.bf16.mxu0 %v3397_v0 }
 0x33f   :  { %2865 = vmatpush3.bf16.msra.mxu0 %v3572_v21 }
 0x340   :  { %2866 = vmatprep.subr.bf16.mxu0 %v3397_v0 }
 0x343   :  { %2868 = vmatpush3.bf16.msra.mxu0 %v3576_v28 }
 0x344   :  { %2869 = vmatprep.subr.bf16.mxu0 %v3397_v0 }
 0x347   :  { %2871 = vmatpush3.bf16.msra.mxu0 %v3580_v34 }
 0x348   :  { %2872 = vmatprep.subr.bf16.mxu0 %v3397_v0 }
 0x34b   :  { %2874 = vmatpush3.bf16.msra.mxu0 %v3584_v40 }
 0x34c   :  { %2875 = vmatprep.subr.bf16.mxu0 %v3397_v0 }
 0x34f   :  { %2877 = vmatpush3.bf16.msra.mxu0 %v3588_v46 }
 0x350   :  { %2878 = vmatprep.subr.bf16.mxu0 %v3397_v0 }
 0x353   :  { %2880 = vmatpush3.bf16.msra.mxu0 %v3592_v50 }
 0x354   :  { %2905 = vmatprep.subr.bf16.mxu0 %v3397_v0 }
 0x409   :  { %v549_v24 = vpop.f32.mrb[10].mxu0 }
 0x40a   :  { %v553_v25 = vadd.f32 %v549_v24, %v244_v23  ;;  %v2205_v26 = vpop.f32.mrb[11].mxu0  ;;  %v857_v24 = vld [vmem:[#allocation10 + $0x70] sm:$0xff] }
 0x40c   :  { %3195 = vtanh.f32 %v553_v25  ;;  %v858_v25 = vld [vmem:[#allocation10 + $0x78] sm:$0xff] }
 0x40d   :  { %v3794_v26 = vpack.c.bf16 %v858_v25, %v857_v24  ;;  %v1570_v24 = vld [vmem:[#allocation11 + $0x38] sm:$0xff] }
 0x416   :  { %v3715_v27 = vpop.eup %3195 }
 0x417   :  { %2239 = vmatmul.mubr.f32.vlgmr.msra.gmra.mrb[4].mxu1 %v3715_v27 }
 0x418   :  { %2883 = vmatpush3.bf16.msra.mxu1 %v3565_v9  ;;  %2308 = vmatprep.mubr.msk.f32.mxu1 %vm3398_vm0, %v3399_v1 }
 0x419   :  { %2884 = vmatprep.subr.bf16.mxu1 %v3397_v0 }
 0x41c   :  { %2886 = vmatpush3.bf16.msra.mxu1 %v3568_v15 }
 0x41d   :  { %2887 = vmatprep.subr.bf16.mxu1 %v3397_v0 }
 0x420   :  { %2889 = vmatpush3.bf16.msra.mxu1 %v3572_v21 }
 0x421   :  { %2890 = vmatprep.subr.bf16.mxu1 %v3397_v0 }
 0x424   :  { %2892 = vmatpush3.bf16.msra.mxu1 %v3576_v28 }
 0x425   :  { %2893 = vmatprep.subr.bf16.mxu1 %v3397_v0 }
 0x428   :  { %2895 = vmatpush3.bf16.msra.mxu1 %v3580_v34 }
 0x429   :  { %2896 = vmatprep.subr.bf16.mxu1 %v3397_v0 }
 0x42c   :  { %2898 = vmatpush3.bf16.msra.mxu1 %v3584_v40 }
 0x42d   :  { %2899 = vmatprep.subr.bf16.mxu1 %v3397_v0 }
 0x430   :  { %2901 = vmatpush3.bf16.msra.mxu1 %v3588_v46 }
 0x431   :  { %2902 = vmatprep.subr.bf16.mxu1 %v3397_v0 }
 0x434   :  { %2904 = vmatpush3.bf16.msra.mxu1 %v3592_v50 }
 0x4ea   :  { %v621_v30 = vpop.f32.mrb[4].mxu1 }
 0x4eb   :  { %v625_v31 = vadd.f32 %v621_v30, %v249_v29  ;;  %v2240_v32 = vpop.f32.mrb[5].mxu1 }
 0x4ed   :  { %3197 = vtanh.f32 %v625_v31 }
 0x4f7   :  { %v3737_v33 = vpop.eup %3197 }
 0x4f8   :  { %2274 = vmatmul.mubr.f32.vlgmr.msra.gmra.mrb[12].mxu0 %v3737_v33 }
 0x4f9   :  { %2907 = vmatpush3.bf16.msra.mxu0 %v3565_v9  ;;  %2343 = vmatprep.mubr.msk.f32.mxu0 %vm3398_vm0, %v3399_v1  ;;  %v859_v9 = vld [vmem:[#allocation7] sm:$0xff] }
 0x4fa   :  { %2908 = vmatprep.subr.bf16.mxu0 %v3397_v0 }
 0x4fd   :  { %2910 = vmatpush3.bf16.msra.mxu0 %v3568_v15  ;;  %v860_v15 = vld [vmem:[#allocation7 + $0x8] sm:$0xff] }
 0x4fe   :  { %2911 = vmatprep.subr.bf16.mxu0 %v3397_v0 }
 0x501   :  { %2913 = vmatpush3.bf16.msra.mxu0 %v3572_v21  ;;  %v2929_v21 = vpack.c.bf16 %v860_v15, %v859_v9 }
 0x502   :  { %2914 = vmatprep.subr.bf16.mxu0 %v3397_v0 }
 0x503   :  { %2930 = vmatprep.subr.bf16.mxu1 %v2929_v21 }
 0x505   :  { %2916 = vmatpush3.bf16.msra.mxu0 %v3576_v28  ;;  %v254_v28 = vadd.f32 %v3662_v6, %v3638_v58  ;;  %v3774_v6 = vpack.c.bf16 %v848_v5, %v847_v4 }
 0x506   :  { %2917 = vmatprep.subr.bf16.mxu0 %v3397_v0 }
 0x509   :  { %2919 = vmatpush3.bf16.msra.mxu0 %v3580_v34 }
 0x50a   :  { %2920 = vmatprep.subr.bf16.mxu0 %v3397_v0 }
 0x50d   :  { %2922 = vmatpush3.bf16.msra.mxu0 %v3584_v40 }
 0x50e   :  { %2923 = vmatprep.subr.bf16.mxu0 %v3397_v0 }
 0x511   :  { %2925 = vmatpush3.bf16.msra.mxu0 %v3588_v46  ;;  %v2941_v46 = vpack.c.bf16 %v866_v45, %v865_v44 }
 0x512   :  { %2926 = vmatprep.subr.bf16.mxu0 %v3397_v0 }
 0x515   :  { %2928 = vmatpush3.bf16.msra.mxu0 %v3592_v50  ;;  %v869_v50 = vld [vmem:[#allocation7 + $0x50] sm:$0xff] }
 0x516   :  { %2961 = vmatprep.subr.bf16.mxu0 %v3397_v0  ;;  %v2949_v52 = vpack.c.bf16 %v870_v51, %v869_v50 }
 0x5cb   :  { %v693_v34 = vpop.f32.mrb[12].mxu0 }
 0x5cc   :  { %v697_v35 = vadd.f32 %v693_v34, %v254_v28  ;;  %v2275_v36 = vpop.f32.mrb[13].mxu0  ;;  %v264_v34 = vadd.f32 %v3666_v8, %v3638_v58 }
 0x5ce   :  { %3199 = vtanh.f32 %v697_v35 }
 0x5d8   :  { %v3200_v40 = vpop.eup %3199 }
 0x5d9   :  { %2309 = vmatmul.mubr.f32.vlgmr.msra.gmra.mrb[6].mxu1 %v3200_v40 }
 0x5da   :  { %2932 = vmatpush3.bf16.msra.mxu1 %v2929_v21  ;;  %2378 = vmatprep.mubr.f32.mxu1 %v3641_v3  ;;  %v3770_v3 = vpack.c.bf16 %v846_v2, %v845_v63 }
 0x5db   :  { %2934 = vmatprep.subr.bf16.mxu1 %v2933_v39 }
 0x5de   :  { %2936 = vmatpush3.bf16.msra.mxu1 %v2933_v39  ;;  %v3854_v39 = vld [vmem:[%s3994_s6] ss:$0 sm:$0xff] }
 0x5df   :  { %2938 = vmatprep.subr.bf16.mxu1 %v2937_v43 }
 0x5e2   :  { %2940 = vmatpush3.bf16.msra.mxu1 %v2937_v43 }
 0x5e3   :  { %2942 = vmatprep.subr.bf16.mxu1 %v2941_v46 }
 0x5e6   :  { %2944 = vmatpush3.bf16.msra.mxu1 %v2941_v46 }
 0x5e7   :  { %2946 = vmatprep.subr.bf16.mxu1 %v2945_v49 }
 0x5ea   :  { %2948 = vmatpush3.bf16.msra.mxu1 %v2945_v49 }
 0x5eb   :  { %2950 = vmatprep.subr.bf16.mxu1 %v2949_v52 }
 0x5ee   :  { %2952 = vmatpush3.bf16.msra.mxu1 %v2949_v52 }
 0x5ef   :  { %2954 = vmatprep.subr.bf16.mxu1 %v2953_v55 }
 0x5f2   :  { %2956 = vmatpush3.bf16.msra.mxu1 %v2953_v55 }
 0x5f3   :  { %2958 = vmatprep.subr.bf16.mxu1 %v2957_v59 }
 0x5f6   :  { %2960 = vmatpush3.bf16.msra.mxu1 %v2957_v59 }
 0x5f7   :  { %2985 = vmatprep.subr.bf16.mxu1 %v3397_v0 }
 0x5f9   :  { %2379 = vmatmul.mubr.f32.vlgmr.msra.gmra.mrb[8].mxu1 %v3671_v16  ;;  %v3782_v16 = vpack.c.bf16 %v852_v14, %v851_v13  ;;  %v1564_v13 = vld [vmem:[#allocation11 + $0x8] sm:$0xff]  ;;  %v1565_v14 = vld [vmem:[#allocation11 + $0x10] sm:$0xff] }
 0x5fa   :  { %2381 = vmatprep.mubr.f32.mxu1 %v3693_v22  ;;  %2987 = vmatpush3.bf16.msra.mxu1 %v3766_v62  ;;  %v856_v22 = vld [vmem:[#allocation10 + $0x68] sm:$0xff]  ;;  %v3157_v18 = vpack.c.bf16 %v1566_v17, %v1565_v14 }
 0x5fb   :  { %2988 = vmatprep.subr.bf16.mxu1 %v3397_v0  ;;  %v3790_v23 = vpack.c.bf16 %v856_v22, %v855_v20  ;;  %v1568_v20 = vld [vmem:[#allocation11 + $0x28] sm:$0xff] }
 0x5fd   :  { %2382 = vmatmul.mubr.f32.gmra.mrb[10].mxu1 %v3715_v27  ;;  %v259_v27 = vadd.f32 %v3638_v58, %v3668_v10 }
 0x5fe   :  { %2384 = vmatprep.mubr.f32.mxu1 %v3737_v33  ;;  %2990 = vmatpush3.bf16.msra.mxu1 %v3770_v3 }
 0x5ff   :  { %2991 = vmatprep.subr.bf16.mxu1 %v3397_v0 }
 0x601   :  { %2385 = vmatmul.mubr.f32.gmra.mrb[12].mxu1 %v3200_v40 }
 0x602   :  { %2993 = vmatpush3.bf16.msra.mxu1 %v3774_v6 }
 0x603   :  { %2994 = vmatprep.subr.bf16.mxu1 %v3397_v0 }
 0x606   :  { %2996 = vmatpush3.bf16.msra.mxu1 %v3778_v12 }
 0x607   :  { %2997 = vmatprep.subr.bf16.mxu1 %v3397_v0 }
 0x60a   :  { %2999 = vmatpush3.bf16.msra.mxu1 %v3782_v16 }
 0x60b   :  { %3000 = vmatprep.subr.bf16.mxu1 %v3397_v0 }
 0x60e   :  { %3002 = vmatpush3.bf16.msra.mxu1 %v3786_v19 }
 0x60f   :  { %3003 = vmatprep.subr.bf16.mxu1 %v3397_v0 }
 0x612   :  { %3005 = vmatpush3.bf16.msra.mxu1 %v3790_v23 }
 0x613   :  { %3006 = vmatprep.subr.bf16.mxu1 %v3397_v0 }
 0x616   :  { %3008 = vmatpush3.bf16.msra.mxu1 %v3794_v26 }
 0x617   :  { %3033 = vmatprep.subr.bf16.mxu1 %v3397_v0 }
 0x6ac   :  { %v765_v29 = vpop.f32.mrb[6].mxu1 }
 0x6ad   :  { %v769_v30 = vadd.f32 %v765_v29, %v259_v27  ;;  %v2310_v31 = vpop.f32.mrb[7].mxu1 }
 0x6af   :  { %3201 = vtanh.f32 %v769_v30 }
 0x6b9   :  { %v3202_v32 = vpop.eup %3201 }
 0x6ba   :  { %2344 = vmatmul.mubr.f32.vlgmr.msra.gmra.mrb[14].mxu0 %v3202_v32  ;;  %2387 = vmatprep.mubr.f32.mxu1 %v3202_v32 }
 0x6bb   :  { %2963 = vmatpush3.bf16.msra.mxu0 %v3766_v62  ;;  %2422 = vmatprep.mubr.msk.f32.mxu0 %vm3398_vm0, %v3399_v1 }
 0x6bc   :  { %2964 = vmatprep.subr.bf16.mxu0 %v3397_v0 }
 0x6bf   :  { %2966 = vmatpush3.bf16.msra.mxu0 %v3770_v3 }
 0x6c0   :  { %2967 = vmatprep.subr.bf16.mxu0 %v3397_v0 }
 0x6c3   :  { %2969 = vmatpush3.bf16.msra.mxu0 %v3774_v6 }
 0x6c4   :  { %2970 = vmatprep.subr.bf16.mxu0 %v3397_v0 }
 0x6c7   :  { %2972 = vmatpush3.bf16.msra.mxu0 %v3778_v12 }
 0x6c8   :  { %2973 = vmatprep.subr.bf16.mxu0 %v3397_v0 }
 0x6cb   :  { %2975 = vmatpush3.bf16.msra.mxu0 %v3782_v16 }
 0x6cc   :  { %v3811_v10 = vpop.f32.mrb[8].mxu1  ;;  %2976 = vmatprep.subr.bf16.mxu0 %v3397_v0 }
 0x6cd   :  { %v948_v33 = vpop.f32.mrb[9].mxu1  ;;  %v954_v45 = vadd.f32 %v3811_v10, %v3854_v39 }
 0x6ce   :  { %v949_v40 = vadd.f32 %v3854_v39, %v948_v33  ;;  %v1573_v33 = vld [vmem:[#allocation11 + $0x50] sm:$0xff] }
 0x6cf   :  { %2978 = vmatpush3.bf16.msra.mxu0 %v3786_v19 }
 0x6d0   :  { %v3815_v9 = vpop.f32.mrb[10].mxu1  ;;  %2979 = vmatprep.subr.bf16.mxu0 %v3397_v0 }
 0x6d1   :  { %v3818_v15 = vpop.f32.mrb[11].mxu1  ;;  %v964_v55 = vadd.f32 %v3815_v9, %v3854_v39  ;;  %v1574_v9 = vld [vmem:[#allocation11 + $0x58] sm:$0xff] }
 0x6d2   :  { %v959_v50 = vadd.f32 %v3854_v39, %v3818_v15  ;;  %v3169_v15 = vpack.c.bf16 %v1574_v9, %v1573_v33 }
 0x6d3   :  { %2981 = vmatpush3.bf16.msra.mxu0 %v3790_v23 }
 0x6d4   :  { %v3821_v21 = vpop.f32.mrb[12].mxu1  ;;  %2982 = vmatprep.subr.bf16.mxu0 %v3397_v0 }
 0x6d5   :  { %v3824_v28 = vpop.f32.mrb[13].mxu1 }
 0x6d6   :  { %v969_v61 = vadd.f32 %v3854_v39, %v3824_v28  ;;  %v1576_v28 = vld [vmem:[#allocation11 + $0x68] sm:$0xff] }
 0x6d7   :  { %2984 = vmatpush3.bf16.msra.mxu0 %v3794_v26 }
 0x6d8   :  { %3009 = vmatprep.subr.bf16.mxu0 %v3397_v0 }
 0x6da   :  { %2423 = vmatmul.mubr.f32.vlgmr.msra.gmra.mrb[16].mxu0 %v3399_v1 }
 0x6db   :  { %3011 = vmatpush3.bf16.msra.mxu0 %v3766_v62  ;;  %2492 = vmatprep.mubr.msk.f32.mxu0 %vm3398_vm0, %v3399_v1 }
 0x6dc   :  { %3012 = vmatprep.subr.bf16.mxu0 %v3397_v0 }
 0x6df   :  { %3014 = vmatpush3.bf16.msra.mxu0 %v3770_v3 }
 0x6e0   :  { %3015 = vmatprep.subr.bf16.mxu0 %v3397_v0 }
 0x6e3   :  { %3017 = vmatpush3.bf16.msra.mxu0 %v3774_v6 }
 0x6e4   :  { %3018 = vmatprep.subr.bf16.mxu0 %v3397_v0 }
 0x6e7   :  { %3020 = vmatpush3.bf16.msra.mxu0 %v3778_v12 }
 0x6e8   :  { %3021 = vmatprep.subr.bf16.mxu0 %v3397_v0 }
 0x6eb   :  { %3023 = vmatpush3.bf16.msra.mxu0 %v3782_v16 }
 0x6ec   :  { %3024 = vmatprep.subr.bf16.mxu0 %v3397_v0 }
 0x6ef   :  { %3026 = vmatpush3.bf16.msra.mxu0 %v3786_v19 }
 0x6f0   :  { %3027 = vmatprep.subr.bf16.mxu0 %v3397_v0 }
 0x6f3   :  { %3029 = vmatpush3.bf16.msra.mxu0 %v3790_v23 }
 0x6f4   :  { %3030 = vmatprep.subr.bf16.mxu0 %v3397_v0 }
 0x6f7   :  { %3032 = vmatpush3.bf16.msra.mxu0 %v3794_v26 }
 0x6f8   :  { %3057 = vmatprep.subr.bf16.mxu0 %v3397_v0 }
 0x78d   :  { %v837_v35 = vpop.f32.mrb[14].mxu0 }
 0x78e   :  { %v841_v36 = vadd.f32 %v837_v35, %v264_v34  ;;  %v2345_v37 = vpop.f32.mrb[15].mxu0  ;;  %v1577_v35 = vld [vmem:[#allocation11 + $0x70] sm:$0xff] }
 0x790   :  { %3203 = vtanh.f32 %v841_v36  ;;  %v1578_v36 = vld [vmem:[#allocation11 + $0x78] sm:$0xff] }
 0x791   :  { %v3175_v37 = vpack.c.bf16 %v1578_v36, %v1577_v35 }
 0x79a   :  { %v3204_v38 = vpop.eup %3203 }
 0x79b   :  { %2388 = vmatmul.mubr.f32.gmra.mrb[14].mxu1 %v3204_v38 }
 0x79c   :  { %2457 = vmatprep.mubr.msk.f32.mxu1 %vm3398_vm0, %v3399_v1 }
 0x7ad   :  { %v1053_v41 = vpop.f32.mrb[16].mxu0 }
 0x7ae   :  { %v1057_v42 = vadd.f32 %v1053_v41, %v949_v40  ;;  %v2424_v43 = vpop.f32.mrb[17].mxu0 }
 0x7b0   :  { %3205 = vtanh.f32 %v1057_v42 }
 0x7ba   :  { %v3206_v58 = vpop.eup %3205 }
 0x7bb   :  { %2458 = vmatmul.mubr.f32.vlgmr.msra.gmra.mrb[16].mxu1 %v3206_v58  ;;  %v1683_v58 = vld [vmem:[%s3996_s8] ss:$0 sm:$0xff] }
 0x7bc   :  { %3035 = vmatpush3.bf16.msra.mxu1 %v3766_v62  ;;  %2527 = vmatprep.mubr.msk.f32.mxu1 %vm3398_vm0, %v3399_v1 }
 0x7bd   :  { %3036 = vmatprep.subr.bf16.mxu1 %v3397_v0 }
 0x7c0   :  { %3038 = vmatpush3.bf16.msra.mxu1 %v3770_v3 }
 0x7c1   :  { %3039 = vmatprep.subr.bf16.mxu1 %v3397_v0 }
 0x7c4   :  { %3041 = vmatpush3.bf16.msra.mxu1 %v3774_v6 }
 0x7c5   :  { %3042 = vmatprep.subr.bf16.mxu1 %v3397_v0 }
 0x7c8   :  { %3044 = vmatpush3.bf16.msra.mxu1 %v3778_v12 }
 0x7c9   :  { %3045 = vmatprep.subr.bf16.mxu1 %v3397_v0 }
 0x7cc   :  { %3047 = vmatpush3.bf16.msra.mxu1 %v3782_v16 }
 0x7cd   :  { %3048 = vmatprep.subr.bf16.mxu1 %v3397_v0 }
 0x7d0   :  { %3050 = vmatpush3.bf16.msra.mxu1 %v3786_v19 }
 0x7d1   :  { %3051 = vmatprep.subr.bf16.mxu1 %v3397_v0 }
 0x7d4   :  { %3053 = vmatpush3.bf16.msra.mxu1 %v3790_v23 }
 0x7d5   :  { %3054 = vmatprep.subr.bf16.mxu1 %v3397_v0 }
 0x7d8   :  { %3056 = vmatpush3.bf16.msra.mxu1 %v3794_v26 }
 0x7d9   :  { %3081 = vmatprep.subr.bf16.mxu1 %v3397_v0 }
 0x86e   :  { %v3875_v8 = vpop.f32.mrb[14].mxu1 }
 0x86f   :  { %v3877_v44 = vpop.f32.mrb[15].mxu1  ;;  %v984_v38 = vadd.f32 %v3875_v8, %v3854_v39 }
 0x870   :  { %v979_v29 = vadd.f32 %v3854_v39, %v3877_v44 }
 0x88e   :  { %v1125_v46 = vpop.f32.mrb[16].mxu1 }
 0x88f   :  { %v1129_v47 = vadd.f32 %v1125_v46, %v954_v45  ;;  %v2459_v48 = vpop.f32.mrb[17].mxu1 }
 0x891   :  { %3207 = vtanh.f32 %v1129_v47 }
 0x89b   :  { %v3208_v49 = vpop.eup %3207 }
 0x89c   :  { %2493 = vmatmul.mubr.f32.vlgmr.msra.gmra.mrb[18].mxu0 %v3208_v49 }
 0x89d   :  { %3059 = vmatpush3.bf16.msra.mxu0 %v3766_v62  ;;  %2562 = vmatprep.mubr.msk.f32.mxu0 %vm3398_vm0, %v3399_v1 }
 0x89e   :  { %3060 = vmatprep.subr.bf16.mxu0 %v3397_v0 }
 0x8a1   :  { %3062 = vmatpush3.bf16.msra.mxu0 %v3770_v3 }
 0x8a2   :  { %3063 = vmatprep.subr.bf16.mxu0 %v3397_v0 }
 0x8a5   :  { %3065 = vmatpush3.bf16.msra.mxu0 %v3774_v6 }
 0x8a6   :  { %3066 = vmatprep.subr.bf16.mxu0 %v3397_v0 }
 0x8a9   :  { %3068 = vmatpush3.bf16.msra.mxu0 %v3778_v12 }
 0x8aa   :  { %3069 = vmatprep.subr.bf16.mxu0 %v3397_v0 }
 0x8ad   :  { %3071 = vmatpush3.bf16.msra.mxu0 %v3782_v16 }
 0x8ae   :  { %3072 = vmatprep.subr.bf16.mxu0 %v3397_v0 }
 0x8b1   :  { %3074 = vmatpush3.bf16.msra.mxu0 %v3786_v19 }
 0x8b2   :  { %3075 = vmatprep.subr.bf16.mxu0 %v3397_v0 }
 0x8b5   :  { %3077 = vmatpush3.bf16.msra.mxu0 %v3790_v23 }
 0x8b6   :  { %3078 = vmatprep.subr.bf16.mxu0 %v3397_v0 }
 0x8b9   :  { %3080 = vmatpush3.bf16.msra.mxu0 %v3794_v26 }
 0x8ba   :  { %3105 = vmatprep.subr.bf16.mxu0 %v3397_v0 }
 0x96f   :  { %v1197_v51 = vpop.f32.mrb[18].mxu0 }
 0x970   :  { %v1201_v52 = vadd.f32 %v1197_v51, %v959_v50  ;;  %v2494_v53 = vpop.f32.mrb[19].mxu0 }
 0x972   :  { %3209 = vtanh.f32 %v1201_v52 }
 0x97c   :  { %v3210_v54 = vpop.eup %3209 }
 0x97d   :  { %2528 = vmatmul.mubr.f32.vlgmr.msra.gmra.mrb[18].mxu1 %v3210_v54 }
 0x97e   :  { %3083 = vmatpush3.bf16.msra.mxu1 %v3766_v62  ;;  %2597 = vmatprep.mubr.msk.f32.mxu1 %vm3398_vm0, %v3399_v1 }
 0x97f   :  { %3084 = vmatprep.subr.bf16.mxu1 %v3397_v0 }
 0x982   :  { %3086 = vmatpush3.bf16.msra.mxu1 %v3770_v3 }
 0x983   :  { %3087 = vmatprep.subr.bf16.mxu1 %v3397_v0 }
 0x986   :  { %3089 = vmatpush3.bf16.msra.mxu1 %v3774_v6 }
 0x987   :  { %3090 = vmatprep.subr.bf16.mxu1 %v3397_v0 }
 0x98a   :  { %3092 = vmatpush3.bf16.msra.mxu1 %v3778_v12 }
 0x98b   :  { %3093 = vmatprep.subr.bf16.mxu1 %v3397_v0 }
 0x98e   :  { %3095 = vmatpush3.bf16.msra.mxu1 %v3782_v16 }
 0x98f   :  { %3096 = vmatprep.subr.bf16.mxu1 %v3397_v0 }
 0x992   :  { %3098 = vmatpush3.bf16.msra.mxu1 %v3786_v19 }
 0x993   :  { %3099 = vmatprep.subr.bf16.mxu1 %v3397_v0 }
 0x996   :  { %3101 = vmatpush3.bf16.msra.mxu1 %v3790_v23 }
 0x997   :  { %3102 = vmatprep.subr.bf16.mxu1 %v3397_v0 }
 0x99a   :  { %3104 = vmatpush3.bf16.msra.mxu1 %v3794_v26 }
 0x99b   :  { %3129 = vmatprep.subr.bf16.mxu1 %v3397_v0 }
 0xa50   :  { %v1269_v56 = vpop.f32.mrb[18].mxu1 }
 0xa51   :  { %v1273_v57 = vadd.f32 %v1269_v56, %v964_v55  ;;  %v2529_v59 = vpop.f32.mrb[19].mxu1 }
 0xa53   :  { %3211 = vtanh.f32 %v1273_v57 }
 0xa5d   :  { %v3212_v60 = vpop.eup %3211 }
 0xa5e   :  { %2563 = vmatmul.mubr.f32.vlgmr.msra.gmra.mrb[20].mxu0 %v3212_v60 }
 0xa5f   :  { %3107 = vmatpush3.bf16.msra.mxu0 %v3766_v62  ;;  %2632 = vmatprep.mubr.msk.f32.mxu0 %vm3398_vm0, %v3399_v1 }
 0xa60   :  { %3108 = vmatprep.subr.bf16.mxu0 %v3397_v0 }
 0xa63   :  { %3110 = vmatpush3.bf16.msra.mxu0 %v3770_v3 }
 0xa64   :  { %3111 = vmatprep.subr.bf16.mxu0 %v3397_v0 }
 0xa67   :  { %3113 = vmatpush3.bf16.msra.mxu0 %v3774_v6 }
 0xa68   :  { %3114 = vmatprep.subr.bf16.mxu0 %v3397_v0 }
 0xa6b   :  { %3116 = vmatpush3.bf16.msra.mxu0 %v3778_v12 }
 0xa6c   :  { %3117 = vmatprep.subr.bf16.mxu0 %v3397_v0 }
 0xa6f   :  { %3119 = vmatpush3.bf16.msra.mxu0 %v3782_v16 }
 0xa70   :  { %3120 = vmatprep.subr.bf16.mxu0 %v3397_v0 }
 0xa73   :  { %3122 = vmatpush3.bf16.msra.mxu0 %v3786_v19 }
 0xa74   :  { %3123 = vmatprep.subr.bf16.mxu0 %v3397_v0 }
 0xa77   :  { %3125 = vmatpush3.bf16.msra.mxu0 %v3790_v23 }
 0xa78   :  { %3126 = vmatprep.subr.bf16.mxu0 %v3397_v0 }
 0xa7b   :  { %3128 = vmatpush3.bf16.msra.mxu0 %v3794_v26 }
 0xa7c   :  { %3153 = vmatprep.subr.bf16.mxu0 %v3397_v0 }
 0xb31   :  { %v1341_v63 = vpop.f32.mrb[20].mxu0 }
 0xb32   :  { %v1345_v2 = vadd.f32 %v1341_v63, %v969_v61  ;;  %v2564_v4 = vpop.f32.mrb[21].mxu0 }
 0xb34   :  { %3213 = vtanh.f32 %v1345_v2 }
 0xb3e   :  { %v3214_v5 = vpop.eup %3213 }
 0xb3f   :  { %2598 = vmatmul.mubr.f32.vlgmr.msra.gmra.mrb[20].mxu1 %v3214_v5 }
 0xb40   :  { %3131 = vmatpush3.bf16.msra.mxu1 %v3766_v62  ;;  %2667 = vmatprep.mubr.msk.f32.mxu1 %vm3398_vm0, %v3399_v1  ;;  %v974_v62 = vadd.f32 %v3821_v21, %v3854_v39  ;;  %v1575_v21 = vld [vmem:[#allocation11 + $0x60] sm:$0xff] }
 0xb41   :  { %3132 = vmatprep.subr.bf16.mxu1 %v3397_v0  ;;  %v3172_v34 = vpack.c.bf16 %v1576_v28, %v1575_v21 }
 0xb44   :  { %3134 = vmatpush3.bf16.msra.mxu1 %v3770_v3 }
 0xb45   :  { %3135 = vmatprep.subr.bf16.mxu1 %v3397_v0 }
 0xb48   :  { %3137 = vmatpush3.bf16.msra.mxu1 %v3774_v6 }
 0xb49   :  { %3138 = vmatprep.subr.bf16.mxu1 %v3397_v0 }
 0xb4c   :  { %3140 = vmatpush3.bf16.msra.mxu1 %v3778_v12  ;;  %v1563_v12 = vld [vmem:[#allocation11] sm:$0xff] }
 0xb4d   :  { %3141 = vmatprep.subr.bf16.mxu1 %v3397_v0 }
 0xb50   :  { %3143 = vmatpush3.bf16.msra.mxu1 %v3782_v16  ;;  %v3154_v16 = vpack.c.bf16 %v1564_v13, %v1563_v12 }
 0xb51   :  { %3144 = vmatprep.subr.bf16.mxu1 %v3397_v0 }
 0xb54   :  { %3146 = vmatpush3.bf16.msra.mxu1 %v3786_v19  ;;  %v1567_v19 = vld [vmem:[#allocation11 + $0x20] sm:$0xff] }
 0xb55   :  { %3147 = vmatprep.subr.bf16.mxu1 %v3397_v0  ;;  %v3160_v22 = vpack.c.bf16 %v1568_v20, %v1567_v19 }
 0xb58   :  { %3149 = vmatpush3.bf16.msra.mxu1 %v3790_v23  ;;  %v1569_v23 = vld [vmem:[#allocation11 + $0x30] sm:$0xff] }
 0xb59   :  { %3150 = vmatprep.subr.bf16.mxu1 %v3397_v0  ;;  %v3163_v25 = vpack.c.bf16 %v1570_v24, %v1569_v23 }
 0xb5c   :  { %3152 = vmatpush3.bf16.msra.mxu1 %v3794_v26  ;;  %v1572_v26 = vld [vmem:[#allocation11 + $0x48] sm:$0xff] }
 0xc12   :  { %v1413_v3 = vpop.f32.mrb[20].mxu1 }
 0xc13   :  { %v1417_v6 = vadd.f32 %v1413_v3, %v974_v62  ;;  %v2599_v7 = vpop.f32.mrb[21].mxu1 }
 0xc15   :  { %3215 = vtanh.f32 %v1417_v6 }
 0xc1f   :  { %v3216_v11 = vpop.eup %3215 }
 0xc20   :  { %2633 = vmatmul.mubr.f32.vlgmr.msra.gmra.mrb[22].mxu0 %v3216_v11 }
 0xc21   :  { %2702 = vmatprep.mubr.msk.f32.mxu0 %vm3398_vm0, %v3399_v1  ;;  %3155 = vmatpush3.bf16.msra.mxu0 %v3154_v16  ;;  %v1571_v1 = vld [vmem:[#allocation11 + $0x40] sm:$0xff] }
 0xc22   :  { %3156 = vmatprep.subr.bf16.mxu0 %v3397_v0  ;;  %v3166_v27 = vpack.c.bf16 %v1572_v26, %v1571_v1 }
 0xc25   :  { %3158 = vmatpush3.bf16.msra.mxu0 %v3157_v18 }
 0xc26   :  { %3159 = vmatprep.subr.bf16.mxu0 %v3397_v0 }
 0xc29   :  { %3161 = vmatpush3.bf16.msra.mxu0 %v3160_v22 }
 0xc2a   :  { %3162 = vmatprep.subr.bf16.mxu0 %v3397_v0 }
 0xc2d   :  { %3164 = vmatpush3.bf16.msra.mxu0 %v3163_v25 }
 0xc2e   :  { %3165 = vmatprep.subr.bf16.mxu0 %v3397_v0 }
 0xc31   :  { %3167 = vmatpush3.bf16.msra.mxu0 %v3166_v27 }
 0xc32   :  { %3168 = vmatprep.subr.bf16.mxu0 %v3397_v0 }
 0xc35   :  { %3170 = vmatpush3.bf16.msra.mxu0 %v3169_v15 }
 0xc36   :  { %3171 = vmatprep.subr.bf16.mxu0 %v3397_v0 }
 0xc39   :  { %3173 = vmatpush3.bf16.msra.mxu0 %v3172_v34 }
 0xc3a   :  { %3174 = vmatprep.subr.bf16.mxu0 %v3397_v0 }
 0xc3d   :  { %3176 = vmatpush3.bf16.msra.mxu0 %v3175_v37 }
 0xcf3   :  { %v1485_v30 = vpop.f32.mrb[22].mxu0 }
 0xcf4   :  { %v1489_v31 = vadd.f32 %v1485_v30, %v979_v29  ;;  %v2634_v32 = vpop.f32.mrb[23].mxu0 }
 0xcf6   :  { %3217 = vtanh.f32 %v1489_v31 }
 0xd00   :  { %v3218_v10 = vpop.eup %3217 }
 0xd01   :  { %2668 = vmatmul.mubr.f32.vlgmr.msra.gmra.mrb[22].mxu1 %v3218_v10 }
 0xdd4   :  { %v1557_v40 = vpop.f32.mrb[22].mxu1 }
 0xdd5   :  { %v1561_v41 = vadd.f32 %v1557_v40, %v984_v38  ;;  %v2669_v42 = vpop.f32.mrb[23].mxu1 }
 0xdd7   :  { %3219 = vtanh.f32 %v1561_v41 }
 0xde1   :  { %v3220_v43 = vpop.eup %3219 }
 0xde2   :  { %2703 = vmatmul.mubr.f32.vlgmr.msra.gmra.mrb[24].mxu0 %v3220_v43 }
 0xeb5   :  { %v1652_v44 = vpop.f32.mrb[24].mxu0 }
 0xeb6   :  { %v1653_v45 = vadd.f32 %v1683_v58, %v1652_v44  ;;  %v2704_v46 = vpop.f32.mrb[25].mxu0 }
 0xeb8   :  { %v1684_v47 = vmul.f32 -1.442695, %v1653_v45 }
 0xeba   :  { %3221 = vpow2.f32 %v1684_v47 }
 0xec4   :  { %v3222_v0 = vpop.eup %3221 }
 0xec5   :  { %v1659_v48 = vadd.f32 1.0, %v3222_v0 }
 0xec7   :  { %3223 = vrcp.f32 %v1659_v48 }
 0xed1   :  { %v3224_v39 = vpop.eup %3223 }
 0xed2   :  { %1662 = vst [vmem:[#allocation13] sm:$0xff] %v3224_v39 }
 0xed3   :  { %3368 = shalt.err (!%p3365_p10)
}
 0xed4   :  { %s3369_s24 = scalar_lea.hbm %s3997_s9, 128 }
 0xed5   :  { %p3370_p11 = scmp.ne.s32.totalorder %s3997_s9, %s3369_s24  ;;  %p3373_p12 = scmp.lt.u32.totalorder %s3369_s24, %s3997_s9 }
 0xed7   :  { %p3375_p13 = pnand %p3373_p12, %p3370_p11 }
 0xed9   :  { %3378 = shalt.err (!%p3375_p13)
}
 0xeda   :  { %1672 = dma.vmem_to_hbm [thread:$0]  %s1670_s19, 128, %s3997_s9, [#allocation4]  }
 0xedb   :  { %3387 = dma.done.wait [#allocation4], 128  }
 0xedc   :  { %3388 = vsyncadd [#allocation4], 4294967168 }
 0xedd   :  { %1676 = vsyncpa [#allocation3], 1 }
 0xede   :  { %1677 = vsyncpa [#allocation6], 1 }
 0xedf   :  { %1678 = vsyncpa [#allocation9], 1 }
 0xee0   :  { %1679 = vsyncpa [#allocation12], 1 }
 0xee1   :  { %1680 = vsyncpa [#allocation4], 1 }

</bundles_post_ra>
